<compile_context>
chip_gen: v6e
topology: v6e:2x2x1
jax: 0.10.0
libtpu: 0.0.40
codegen_flags: <defaults>
</compile_context>

<pallas_src>
import math

import jax
import jax.numpy as jnp
from jax.experimental import pallas as pl
from jax.experimental.pallas import tpu as pltpu

# ---- module hyperparameters (small, consistent with the forward pass) ----
BATCH = 2
FRAMES_SEQUENCE = 8      # sequence length S
FEATURE_SIZE = 32        # model dim D
NUM_HEADS = 4            # hardcoded "4" in PayAttention2D.__init__
HEAD_DIM = FEATURE_SIZE // NUM_HEADS
FFN_DIM = 1200           # hardcoded "1200" in PayAttention2D.__init__
FFN_PAD = 1280           # 10 x 128: lane-aligned, zero-padded (numerically exact)
LN_EPS = 1e-5


def encoder_layer_kernel(x_ref, pe_ref, wqkv_ref, bqkv_ref, wo_ref, bo_ref,
                         g1_ref, beta1_ref, w1_ref, b1_ref, w2t_ref, b2_ref,
                         g2_ref, beta2_ref, o_ref):
    """Full encoder layer for the whole batch in one invocation."""
    B, S, D = x_ref.shape
    H, dh = NUM_HEADS, HEAD_DIM
    N = B * S

    # positional encoding add (VPU), then fold batch into rows for the matmuls
    x = x_ref[...] + pe_ref[...]                      # (B, S, D) broadcast add
    xf = x.reshape(N, D)                              # (16, 32) — layout-preserving

    # ---- fused QKV projection: one bf16 MXU op, f32 accumulate --------------
    # Softmax scale 1/sqrt(dh) is folded into the Q columns of wqkv/bqkv.
    qkv = jnp.dot(xf.astype(jnp.bfloat16), wqkv_ref[...],
                  preferred_element_type=jnp.float32) + bqkv_ref[...]  # (16, 96)

    def gather_heads(base):
        # (N, 3D) -> (H*B, S, dh): static lane slices + leading-axis concat.
        parts = [qkv[:, base + h * dh: base + (h + 1) * dh].reshape(B, S, dh)
                 for h in range(H)]
        return jnp.concatenate(parts, axis=0)         # (8, 8, 8)

    qh = gather_heads(0).astype(jnp.bfloat16)
    kh = gather_heads(D).astype(jnp.bfloat16)
    vh = gather_heads(2 * D).astype(jnp.bfloat16)

    # ---- one batched softmax over all B*H head-batches ----------------------
    s = jnp.einsum('nqd,nkd->nqk', qh, kh,
                   preferred_element_type=jnp.float32)        # (8, 8, 8) f32
    s = s - jnp.max(s, axis=-1, keepdims=True)
    p = jnp.exp(s)
    p = p / jnp.sum(p, axis=-1, keepdims=True)                # exact softmax
    ctx = jnp.einsum('nqk,nkd->nqd', p.astype(jnp.bfloat16), vh,
                     preferred_element_type=jnp.float32)      # (8, 8, 8)

    # ---- merge heads: one lane concat + ONE output projection ---------------
    ctx_flat = jnp.concatenate(
        [ctx[h * B:(h + 1) * B].reshape(N, dh) for h in range(H)], axis=1)
    attn = jnp.dot(ctx_flat.astype(jnp.bfloat16), wo_ref[...],
                   preferred_element_type=jnp.float32) + bo_ref[...]

    # ---- residual + LayerNorm 1 (f32) ---------------------------------------
    y = xf + attn
    mu = jnp.mean(y, axis=-1, keepdims=True)
    var = jnp.mean((y - mu) ** 2, axis=-1, keepdims=True)
    y = (y - mu) * jax.lax.rsqrt(var + LN_EPS) * g1_ref[...] + beta1_ref[...]

    # ---- FFN: bf16 operands straight to the MXU, f32 accumulate -------------
    # w2 stored transposed lane-dense (D, 1280): transposed-RHS contraction.
    h1 = jnp.maximum(
        jnp.dot(y.astype(jnp.bfloat16), w1_ref[...],
                preferred_element_type=jnp.float32) + b1_ref[...], 0.0)
    f = jax.lax.dot_general(
        h1.astype(jnp.bfloat16), w2t_ref[...],
        dimension_numbers=(((1,), (1,)), ((), ())),
        preferred_element_type=jnp.float32) + b2_ref[...]

    # ---- residual + LayerNorm 2 ---------------------------------------------
    z = y + f
    mu2 = jnp.mean(z, axis=-1, keepdims=True)
    var2 = jnp.mean((z - mu2) ** 2, axis=-1, keepdims=True)
    out = (z - mu2) * jax.lax.rsqrt(var2 + LN_EPS) * g2_ref[...] + beta2_ref[...]

    o_ref[...] = out.reshape(B, S, D).astype(o_ref.dtype)


def pay_attention_2d_forward(x, params):
    """x: (B, 1, S, D) float32 -> (B, S, D) float32."""
    B, C, S, D = x.shape
    assert C == 1 and S == FRAMES_SEQUENCE and D == FEATURE_SIZE
    x3 = x.reshape(B, S, D)                           # torch.squeeze + view

    # ---- trace-time weight plumbing (runs once under jit, outside the kernel)
    scale = 1.0 / math.sqrt(HEAD_DIM)
    # fused QKV weight, bf16 for the MXU; softmax scale folded into Q columns
    wqkv = jnp.concatenate(
        [params["wq"] * scale, params["wk"], params["wv"]], axis=1
    ).astype(jnp.bfloat16)                            # (D, 3D)
    bqkv = jnp.concatenate(
        [params["bq"] * scale, params["bk"], params["bv"]], axis=1)   # (1, 3D)
    wo = params["wo"].astype(jnp.bfloat16)            # (D, D)

    # FFN: zero-pad 1200 -> 1280 (exact: relu(0)=0, zero weight columns/rows);
    # store w2 transposed so its contraction weight is lane-dense (D, 1280).
    pad = FFN_PAD - FFN_DIM
    w1p = jnp.pad(params["w1"], ((0, 0), (0, pad))).astype(jnp.bfloat16)
    b1p = jnp.pad(params["b1"], ((0, 0), (0, pad)))
    w2t = jnp.pad(params["w2"].T, ((0, 0), (0, pad))).astype(jnp.bfloat16)

    ordered = [params["pe"], wqkv, bqkv, wo, params["bo"],
               params["g1"], params["beta1"],
               w1p, b1p, w2t, params["b2"],
               params["g2"], params["beta2"]]

    vmem = pl.BlockSpec(memory_space=pltpu.MemorySpace.VMEM)
    out = pl.pallas_call(
        encoder_layer_kernel,
        out_shape=jax.ShapeDtypeStruct((B, S, D), jnp.float32),
        in_specs=[vmem] * (1 + len(ordered)),
        out_specs=vmem,
    )(x3, *ordered)
    return out


# ---------------------- parameter / reference helpers ----------------------
def make_params(key):
    D, F, S = FEATURE_SIZE, FFN_DIM, FRAMES_SEQUENCE
    ks = jax.random.split(key, 6)
    init = lambda k, shape: (0.02 * jax.random.normal(k, shape)).astype(jnp.float32)

    # sinusoidal positional encoding table (S, D)
    pos = jnp.arange(S, dtype=jnp.float32)[:, None]
    i = jnp.arange(D // 2, dtype=jnp.float32)[None, :]
    inv_freq = jnp.exp(-(2.0 * i / D) * jnp.log(10000.0))
    pe = jnp.zeros((S, D), jnp.float32)
    pe = pe.at[:, 0::2].set(jnp.sin(pos * inv_freq))
    pe = pe.at[:, 1::2].set(jnp.cos(pos * inv_freq))

    return dict(
        pe=pe,
        wq=init(ks[0], (D, D)), bq=jnp.zeros((1, D), jnp.float32),
        wk=init(ks[1], (D, D)), bk=jnp.zeros((1, D), jnp.float32),
        wv=init(ks[2], (D, D)), bv=jnp.zeros((1, D), jnp.float32),
        wo=init(ks[3], (D, D)), bo=jnp.zeros((1, D), jnp.float32),
        g1=jnp.ones((1, D), jnp.float32), beta1=jnp.zeros((1, D), jnp.float32),
        w1=init(ks[4], (D, F)), b1=jnp.zeros((1, F), jnp.float32),
        w2=init(ks[5], (F, D)), b2=jnp.zeros((1, D), jnp.float32),
        g2=jnp.ones((1, D), jnp.float32), beta2=jnp.zeros((1, D), jnp.float32),
    )


def reference_forward(x, p):
    """Pure-JAX f32 reference of the same math (for correctness check)."""
    B, _, S, D = x.shape
    xb = x.reshape(B, S, D) + p["pe"][None]
    q = xb @ p["wq"] + p["bq"]
    k = xb @ p["wk"] + p["bk"]
    v = xb @ p["wv"] + p["bv"]
    qh = q.reshape(B, S, NUM_HEADS, HEAD_DIM)
    kh = k.reshape(B, S, NUM_HEADS, HEAD_DIM)
    vh = v.reshape(B, S, NUM_HEADS, HEAD_DIM)
    s = jnp.einsum("bqhd,bkhd->bhqk", qh, kh) / math.sqrt(HEAD_DIM)
    pmat = jax.nn.softmax(s, axis=-1)
    ctx = jnp.einsum("bhqk,bkhd->bqhd", pmat, vh).reshape(B, S, D)
    attn = ctx @ p["wo"] + p["bo"]

    def ln(z, g, b):
        mu = jnp.mean(z, -1, keepdims=True)
        var = jnp.mean((z - mu) ** 2, -1, keepdims=True)
        return (z - mu) * jax.lax.rsqrt(var + LN_EPS) * g + b

    y = ln(xb + attn, p["g1"], p["beta1"])
    f = jnp.maximum(y @ p["w1"] + p["b1"], 0.0) @ p["w2"] + p["b2"]
    return ln(y + f, p["g2"], p["beta2"])


if __name__ == "__main__":
    key = jax.random.PRNGKey(0)
    kx, kp = jax.random.split(key)
    x = jax.random.normal(
        kx, (BATCH, 1, FRAMES_SEQUENCE, FEATURE_SIZE), dtype=jnp.float32)
    params = make_params(kp)

    fwd = jax.jit(pay_attention_2d_forward)
    out = jax.block_until_ready(fwd(x, params))

    ref = reference_forward(x, params)
    assert out.shape == (BATCH, FRAMES_SEQUENCE, FEATURE_SIZE)
    # bf16 MXU operands vs. the all-f32 reference: expected deviation ~1e-3
    assert jnp.allclose(out, ref, rtol=2e-2, atol=2e-2), "mismatch vs JAX reference"
    print("KERNEL_OK")
</pallas_src>

<mosaic_0001>
module attributes {stable_mosaic.version = 11 : i64} {
  func.func @encoder_layer_kernel(%arg0: memref<2x8x32xf32, #tpu.memory_space<vmem>>, %arg1: memref<8x32xf32, #tpu.memory_space<vmem>>, %arg2: memref<32x96xbf16, #tpu.memory_space<vmem>>, %arg3: memref<1x96xf32, #tpu.memory_space<vmem>>, %arg4: memref<32x32xbf16, #tpu.memory_space<vmem>>, %arg5: memref<1x32xf32, #tpu.memory_space<vmem>>, %arg6: memref<1x32xf32, #tpu.memory_space<vmem>>, %arg7: memref<1x32xf32, #tpu.memory_space<vmem>>, %arg8: memref<32x1280xbf16, #tpu.memory_space<vmem>>, %arg9: memref<1x1280xf32, #tpu.memory_space<vmem>>, %arg10: memref<32x1280xbf16, #tpu.memory_space<vmem>>, %arg11: memref<1x32xf32, #tpu.memory_space<vmem>>, %arg12: memref<1x32xf32, #tpu.memory_space<vmem>>, %arg13: memref<1x32xf32, #tpu.memory_space<vmem>>, %arg14: memref<2x8x32xf32, #tpu.memory_space<vmem>>) attributes {dimension_semantics = [], scalar_prefetch = 0 : i64, scratch_operands = 0 : i64, tpu.core_type = #tpu.core_type<tc>} {
    %c0 = arith.constant 0 : index
    %c0_0 = arith.constant 0 : index
    %c0_1 = arith.constant 0 : index
    %0 = vector.load %arg0[%c0, %c0_0, %c0_1] : memref<2x8x32xf32, #tpu.memory_space<vmem>>, vector<2x8x32xf32>
    %c0_2 = arith.constant 0 : index
    %c0_3 = arith.constant 0 : index
    %1 = vector.load %arg1[%c0_2, %c0_3] : memref<8x32xf32, #tpu.memory_space<vmem>>, vector<8x32xf32>
    %2 = vector.shape_cast %1 : vector<8x32xf32> to vector<1x8x32xf32>
    %3 = vector.broadcast %2 : vector<1x8x32xf32> to vector<2x8x32xf32>
    %4 = arith.addf %0, %3 : vector<2x8x32xf32>
    %5 = vector.shape_cast %4 : vector<2x8x32xf32> to vector<16x32xf32>
    %6 = arith.truncf %5 : vector<16x32xf32> to vector<16x32xbf16>
    %c0_4 = arith.constant 0 : index
    %c0_5 = arith.constant 0 : index
    %7 = vector.load %arg2[%c0_4, %c0_5] : memref<32x96xbf16, #tpu.memory_space<vmem>>, vector<32x96xbf16>
    %cst = arith.constant dense<0.000000e+00> : vector<16x96xf32>
    %8 = tpu.matmul %6, %7, %cst {dimension_numbers = #tpu.dot_dimension_numbers<[1], [0], [0], [1], [0, 0, 1, 1], [], []>} : vector<16x32xbf16>, vector<32x96xbf16>, vector<16x96xf32> -> vector<16x96xf32>
    %c0_6 = arith.constant 0 : index
    %c0_7 = arith.constant 0 : index
    %9 = vector.load %arg3[%c0_6, %c0_7] : memref<1x96xf32, #tpu.memory_space<vmem>>, vector<1x96xf32>
    %10 = vector.broadcast %9 : vector<1x96xf32> to vector<16x96xf32>
    %11 = arith.addf %8, %10 : vector<16x96xf32>
    %12 = vector.extract_strided_slice %11 {offsets = [0, 0], sizes = [16, 8], strides = [1, 1]} : vector<16x96xf32> to vector<16x8xf32>
    %13 = vector.shape_cast %12 : vector<16x8xf32> to vector<2x8x8xf32>
    %14 = vector.extract_strided_slice %11 {offsets = [0, 8], sizes = [16, 8], strides = [1, 1]} : vector<16x96xf32> to vector<16x8xf32>
    %15 = vector.shape_cast %14 : vector<16x8xf32> to vector<2x8x8xf32>
    %16 = vector.extract_strided_slice %11 {offsets = [0, 16], sizes = [16, 8], strides = [1, 1]} : vector<16x96xf32> to vector<16x8xf32>
    %17 = vector.shape_cast %16 : vector<16x8xf32> to vector<2x8x8xf32>
    %18 = vector.extract_strided_slice %11 {offsets = [0, 24], sizes = [16, 8], strides = [1, 1]} : vector<16x96xf32> to vector<16x8xf32>
    %19 = vector.shape_cast %18 : vector<16x8xf32> to vector<2x8x8xf32>
    %20 = tpu.concatenate %13, %15, %17, %19 in 0 : vector<2x8x8xf32>, vector<2x8x8xf32>, vector<2x8x8xf32>, vector<2x8x8xf32> -> vector<8x8x8xf32>
    %21 = arith.truncf %20 : vector<8x8x8xf32> to vector<8x8x8xbf16>
    %22 = vector.extract_strided_slice %11 {offsets = [0, 32], sizes = [16, 8], strides = [1, 1]} : vector<16x96xf32> to vector<16x8xf32>
    %23 = vector.shape_cast %22 : vector<16x8xf32> to vector<2x8x8xf32>
    %24 = vector.extract_strided_slice %11 {offsets = [0, 40], sizes = [16, 8], strides = [1, 1]} : vector<16x96xf32> to vector<16x8xf32>
    %25 = vector.shape_cast %24 : vector<16x8xf32> to vector<2x8x8xf32>
    %26 = vector.extract_strided_slice %11 {offsets = [0, 48], sizes = [16, 8], strides = [1, 1]} : vector<16x96xf32> to vector<16x8xf32>
    %27 = vector.shape_cast %26 : vector<16x8xf32> to vector<2x8x8xf32>
    %28 = vector.extract_strided_slice %11 {offsets = [0, 56], sizes = [16, 8], strides = [1, 1]} : vector<16x96xf32> to vector<16x8xf32>
    %29 = vector.shape_cast %28 : vector<16x8xf32> to vector<2x8x8xf32>
    %30 = tpu.concatenate %23, %25, %27, %29 in 0 : vector<2x8x8xf32>, vector<2x8x8xf32>, vector<2x8x8xf32>, vector<2x8x8xf32> -> vector<8x8x8xf32>
    %31 = arith.truncf %30 : vector<8x8x8xf32> to vector<8x8x8xbf16>
    %32 = vector.extract_strided_slice %11 {offsets = [0, 64], sizes = [16, 8], strides = [1, 1]} : vector<16x96xf32> to vector<16x8xf32>
    %33 = vector.shape_cast %32 : vector<16x8xf32> to vector<2x8x8xf32>
    %34 = vector.extract_strided_slice %11 {offsets = [0, 72], sizes = [16, 8], strides = [1, 1]} : vector<16x96xf32> to vector<16x8xf32>
    %35 = vector.shape_cast %34 : vector<16x8xf32> to vector<2x8x8xf32>
    %36 = vector.extract_strided_slice %11 {offsets = [0, 80], sizes = [16, 8], strides = [1, 1]} : vector<16x96xf32> to vector<16x8xf32>
    %37 = vector.shape_cast %36 : vector<16x8xf32> to vector<2x8x8xf32>
    %38 = vector.extract_strided_slice %11 {offsets = [0, 88], sizes = [16, 8], strides = [1, 1]} : vector<16x96xf32> to vector<16x8xf32>
    %39 = vector.shape_cast %38 : vector<16x8xf32> to vector<2x8x8xf32>
    %40 = tpu.concatenate %33, %35, %37, %39 in 0 : vector<2x8x8xf32>, vector<2x8x8xf32>, vector<2x8x8xf32>, vector<2x8x8xf32> -> vector<8x8x8xf32>
    %41 = arith.truncf %40 : vector<8x8x8xf32> to vector<8x8x8xbf16>
    "tpu.trace_start"() <{level = 10 : i32, message = "nqd,nkd->nqk"}> : () -> ()
    %cst_8 = arith.constant dense<0.000000e+00> : vector<8x8x8xf32>
    %42 = tpu.matmul %21, %31, %cst_8 {dimension_numbers = #tpu.dot_dimension_numbers<[2], [2], [1], [1], [0, 0, 0, 1, 1, 1], [0], [0]>} : vector<8x8x8xbf16>, vector<8x8x8xbf16>, vector<8x8x8xf32> -> vector<8x8x8xf32>
    "tpu.trace_stop"() : () -> ()
    %cst_9 = arith.constant dense<0xFF800000> : vector<8x8xf32>
    %43 = vector.multi_reduction <maximumf>, %42, %cst_9 [2] : vector<8x8x8xf32> to vector<8x8xf32>
    %44 = vector.shape_cast %43 : vector<8x8xf32> to vector<8x8x1xf32>
    %45 = vector.broadcast %44 : vector<8x8x1xf32> to vector<8x8x8xf32>
    %46 = arith.subf %42, %45 : vector<8x8x8xf32>
    %47 = math.exp %46 : vector<8x8x8xf32>
    %cst_10 = arith.constant dense<0.000000e+00> : vector<8x8xf32>
    %48 = vector.multi_reduction <add>, %47, %cst_10 [2] : vector<8x8x8xf32> to vector<8x8xf32>
    %49 = vector.shape_cast %48 : vector<8x8xf32> to vector<8x8x1xf32>
    %50 = vector.broadcast %49 : vector<8x8x1xf32> to vector<8x8x8xf32>
    %51 = arith.divf %47, %50 : vector<8x8x8xf32>
    %52 = arith.truncf %51 : vector<8x8x8xf32> to vector<8x8x8xbf16>
    "tpu.trace_start"() <{level = 10 : i32, message = "nqk,nkd->nqd"}> : () -> ()
    %cst_11 = arith.constant dense<0.000000e+00> : vector<8x8x8xf32>
    %53 = tpu.matmul %52, %41, %cst_11 {dimension_numbers = #tpu.dot_dimension_numbers<[2], [1], [1], [2], [0, 0, 0, 1, 1, 2], [0], [0]>} : vector<8x8x8xbf16>, vector<8x8x8xbf16>, vector<8x8x8xf32> -> vector<8x8x8xf32>
    "tpu.trace_stop"() : () -> ()
    %54 = vector.extract_strided_slice %53 {offsets = [0, 0, 0], sizes = [2, 8, 8], strides = [1, 1, 1]} : vector<8x8x8xf32> to vector<2x8x8xf32>
    %55 = vector.shape_cast %54 : vector<2x8x8xf32> to vector<16x8xf32>
    %56 = vector.extract_strided_slice %53 {offsets = [2, 0, 0], sizes = [2, 8, 8], strides = [1, 1, 1]} : vector<8x8x8xf32> to vector<2x8x8xf32>
    %57 = vector.shape_cast %56 : vector<2x8x8xf32> to vector<16x8xf32>
    %58 = vector.extract_strided_slice %53 {offsets = [4, 0, 0], sizes = [2, 8, 8], strides = [1, 1, 1]} : vector<8x8x8xf32> to vector<2x8x8xf32>
    %59 = vector.shape_cast %58 : vector<2x8x8xf32> to vector<16x8xf32>
    %60 = vector.extract_strided_slice %53 {offsets = [6, 0, 0], sizes = [2, 8, 8], strides = [1, 1, 1]} : vector<8x8x8xf32> to vector<2x8x8xf32>
    %61 = vector.shape_cast %60 : vector<2x8x8xf32> to vector<16x8xf32>
    %62 = tpu.concatenate %55, %57, %59, %61 in 1 : vector<16x8xf32>, vector<16x8xf32>, vector<16x8xf32>, vector<16x8xf32> -> vector<16x32xf32>
    %63 = arith.truncf %62 : vector<16x32xf32> to vector<16x32xbf16>
    %c0_12 = arith.constant 0 : index
    %c0_13 = arith.constant 0 : index
    %64 = vector.load %arg4[%c0_12, %c0_13] : memref<32x32xbf16, #tpu.memory_space<vmem>>, vector<32x32xbf16>
    %cst_14 = arith.constant dense<0.000000e+00> : vector<16x32xf32>
    %65 = tpu.matmul %63, %64, %cst_14 {dimension_numbers = #tpu.dot_dimension_numbers<[1], [0], [0], [1], [0, 0, 1, 1], [], []>} : vector<16x32xbf16>, vector<32x32xbf16>, vector<16x32xf32> -> vector<16x32xf32>
    %c0_15 = arith.constant 0 : index
    %c0_16 = arith.constant 0 : index
    %66 = vector.load %arg5[%c0_15, %c0_16] : memref<1x32xf32, #tpu.memory_space<vmem>>, vector<1x32xf32>
    %67 = vector.broadcast %66 : vector<1x32xf32> to vector<16x32xf32>
    %68 = arith.addf %65, %67 : vector<16x32xf32>
    %69 = arith.addf %5, %68 : vector<16x32xf32>
    %cst_17 = arith.constant dense<0.000000e+00> : vector<16xf32>
    %70 = vector.multi_reduction <add>, %69, %cst_17 [1] : vector<16x32xf32> to vector<16xf32>
    %71 = vector.shape_cast %70 : vector<16xf32> to vector<16x1xf32>
    %cst_18 = arith.constant 3.200000e+01 : f32
    %72 = vector.broadcast %cst_18 : f32 to vector<16x1xf32>
    %73 = arith.divf %71, %72 : vector<16x1xf32>
    %74 = vector.broadcast %73 : vector<16x1xf32> to vector<16x32xf32>
    %75 = arith.subf %69, %74 : vector<16x32xf32>
    %76 = arith.mulf %75, %75 : vector<16x32xf32>
    %cst_19 = arith.constant dense<0.000000e+00> : vector<16xf32>
    %77 = vector.multi_reduction <add>, %76, %cst_19 [1] : vector<16x32xf32> to vector<16xf32>
    %78 = vector.shape_cast %77 : vector<16xf32> to vector<16x1xf32>
    %cst_20 = arith.constant 3.200000e+01 : f32
    %79 = vector.broadcast %cst_20 : f32 to vector<16x1xf32>
    %80 = arith.divf %78, %79 : vector<16x1xf32>
    %81 = vector.broadcast %73 : vector<16x1xf32> to vector<16x32xf32>
    %82 = arith.subf %69, %81 : vector<16x32xf32>
    %cst_21 = arith.constant 9.99999974E-6 : f32
    %83 = vector.broadcast %cst_21 : f32 to vector<16x1xf32>
    %84 = arith.addf %80, %83 : vector<16x1xf32>
    %85 = math.rsqrt %84 : vector<16x1xf32>
    %86 = vector.broadcast %85 : vector<16x1xf32> to vector<16x32xf32>
    %87 = arith.mulf %82, %86 : vector<16x32xf32>
    %c0_22 = arith.constant 0 : index
    %c0_23 = arith.constant 0 : index
    %88 = vector.load %arg6[%c0_22, %c0_23] : memref<1x32xf32, #tpu.memory_space<vmem>>, vector<1x32xf32>
    %89 = vector.broadcast %88 : vector<1x32xf32> to vector<16x32xf32>
    %90 = arith.mulf %87, %89 : vector<16x32xf32>
    %c0_24 = arith.constant 0 : index
    %c0_25 = arith.constant 0 : index
    %91 = vector.load %arg7[%c0_24, %c0_25] : memref<1x32xf32, #tpu.memory_space<vmem>>, vector<1x32xf32>
    %92 = vector.broadcast %91 : vector<1x32xf32> to vector<16x32xf32>
    %93 = arith.addf %90, %92 : vector<16x32xf32>
    %94 = arith.truncf %93 : vector<16x32xf32> to vector<16x32xbf16>
    %c0_26 = arith.constant 0 : index
    %c0_27 = arith.constant 0 : index
    %95 = vector.load %arg8[%c0_26, %c0_27] : memref<32x1280xbf16, #tpu.memory_space<vmem>>, vector<32x1280xbf16>
    %cst_28 = arith.constant dense<0.000000e+00> : vector<16x1280xf32>
    %96 = tpu.matmul %94, %95, %cst_28 {dimension_numbers = #tpu.dot_dimension_numbers<[1], [0], [0], [1], [0, 0, 1, 1], [], []>} : vector<16x32xbf16>, vector<32x1280xbf16>, vector<16x1280xf32> -> vector<16x1280xf32>
    %c0_29 = arith.constant 0 : index
    %c0_30 = arith.constant 0 : index
    %97 = vector.load %arg9[%c0_29, %c0_30] : memref<1x1280xf32, #tpu.memory_space<vmem>>, vector<1x1280xf32>
    %98 = vector.broadcast %97 : vector<1x1280xf32> to vector<16x1280xf32>
    %99 = arith.addf %96, %98 : vector<16x1280xf32>
    %cst_31 = arith.constant 0.000000e+00 : f32
    %100 = vector.broadcast %cst_31 : f32 to vector<16x1280xf32>
    %101 = arith.maximumf %99, %100 : vector<16x1280xf32>
    %102 = arith.truncf %101 : vector<16x1280xf32> to vector<16x1280xbf16>
    %c0_32 = arith.constant 0 : index
    %c0_33 = arith.constant 0 : index
    %103 = vector.load %arg10[%c0_32, %c0_33] : memref<32x1280xbf16, #tpu.memory_space<vmem>>, vector<32x1280xbf16>
    %cst_34 = arith.constant dense<0.000000e+00> : vector<16x32xf32>
    %104 = tpu.matmul %102, %103, %cst_34 {dimension_numbers = #tpu.dot_dimension_numbers<[1], [1], [0], [0], [0, 0, 1, 0], [], []>} : vector<16x1280xbf16>, vector<32x1280xbf16>, vector<16x32xf32> -> vector<16x32xf32>
    %c0_35 = arith.constant 0 : index
    %c0_36 = arith.constant 0 : index
    %105 = vector.load %arg11[%c0_35, %c0_36] : memref<1x32xf32, #tpu.memory_space<vmem>>, vector<1x32xf32>
    %106 = vector.broadcast %105 : vector<1x32xf32> to vector<16x32xf32>
    %107 = arith.addf %104, %106 : vector<16x32xf32>
    %108 = arith.addf %93, %107 : vector<16x32xf32>
    %cst_37 = arith.constant dense<0.000000e+00> : vector<16xf32>
    %109 = vector.multi_reduction <add>, %108, %cst_37 [1] : vector<16x32xf32> to vector<16xf32>
    %110 = vector.shape_cast %109 : vector<16xf32> to vector<16x1xf32>
    %cst_38 = arith.constant 3.200000e+01 : f32
    %111 = vector.broadcast %cst_38 : f32 to vector<16x1xf32>
    %112 = arith.divf %110, %111 : vector<16x1xf32>
    %113 = vector.broadcast %112 : vector<16x1xf32> to vector<16x32xf32>
    %114 = arith.subf %108, %113 : vector<16x32xf32>
    %115 = arith.mulf %114, %114 : vector<16x32xf32>
    %cst_39 = arith.constant dense<0.000000e+00> : vector<16xf32>
    %116 = vector.multi_reduction <add>, %115, %cst_39 [1] : vector<16x32xf32> to vector<16xf32>
    %117 = vector.shape_cast %116 : vector<16xf32> to vector<16x1xf32>
    %cst_40 = arith.constant 3.200000e+01 : f32
    %118 = vector.broadcast %cst_40 : f32 to vector<16x1xf32>
    %119 = arith.divf %117, %118 : vector<16x1xf32>
    %120 = vector.broadcast %112 : vector<16x1xf32> to vector<16x32xf32>
    %121 = arith.subf %108, %120 : vector<16x32xf32>
    %cst_41 = arith.constant 9.99999974E-6 : f32
    %122 = vector.broadcast %cst_41 : f32 to vector<16x1xf32>
    %123 = arith.addf %119, %122 : vector<16x1xf32>
    %124 = math.rsqrt %123 : vector<16x1xf32>
    %125 = vector.broadcast %124 : vector<16x1xf32> to vector<16x32xf32>
    %126 = arith.mulf %121, %125 : vector<16x32xf32>
    %c0_42 = arith.constant 0 : index
    %c0_43 = arith.constant 0 : index
    %127 = vector.load %arg12[%c0_42, %c0_43] : memref<1x32xf32, #tpu.memory_space<vmem>>, vector<1x32xf32>
    %128 = vector.broadcast %127 : vector<1x32xf32> to vector<16x32xf32>
    %129 = arith.mulf %126, %128 : vector<16x32xf32>
    %c0_44 = arith.constant 0 : index
    %c0_45 = arith.constant 0 : index
    %130 = vector.load %arg13[%c0_44, %c0_45] : memref<1x32xf32, #tpu.memory_space<vmem>>, vector<1x32xf32>
    %131 = vector.broadcast %130 : vector<1x32xf32> to vector<16x32xf32>
    %132 = arith.addf %129, %131 : vector<16x32xf32>
    %133 = vector.shape_cast %132 : vector<16x32xf32> to vector<2x8x32xf32>
    %c0_46 = arith.constant 0 : index
    %c0_47 = arith.constant 0 : index
    %c0_48 = arith.constant 0 : index
    %134 = vector.load %arg14[%c0_46, %c0_47, %c0_48] : memref<2x8x32xf32, #tpu.memory_space<vmem>>, vector<2x8x32xf32>
    tpu.vector_store %arg14[%c0_46, %c0_47, %c0_48], %133 {strides = array<i32>} : memref<2x8x32xf32, #tpu.memory_space<vmem>>, vector<2x8x32xf32>,
    return
  }
}

</mosaic_0001>

<bundles_post_ra>
// kernel: pay_attention_2d_forward.1
= control target key start
LH: loop header
LB: loop body
LE: loop exit
PB: predicated region body
PF: predicated region fallthrough
CT: control target
= control target key end

     0   :  { %v2384_v1 = vmov 0.0   ;;  %vm2385_vm0 = vmmov 0   ;;  %vm78_vm1 = vcmask 261120   ;;  %s2882_s0 = inlined_call_operand.vmem [shape: f32[2,8,32], index: 0, kind: input, shape index: {}]   ;;  %s2883_s1 = inlined_call_operand.vmem [shape: f32[8,32], index: 1, kind: input, shape index: {}]   ;;  %s2884_s2 = inlined_call_operand.vmem [shape: bf16[32,96], index: 2, kind: input, shape index: {}]   ;;  %s2885_s3 = inlined_call_operand.vmem [shape: f32[1,96], index: 3, kind: input, shape index: {}]   ;;  %s2886_s4 = inlined_call_operand.vmem [shape: bf16[32,32], index: 4, kind: input, shape index: {}]   ;;  %s2887_s5 = inlined_call_operand.vmem [shape: f32[1,32], index: 5, kind: input, shape index: {}]   ;;  %s2888_s6 = inlined_call_operand.vmem [shape: f32[1,32], index: 6, kind: input, shape index: {}]   ;;  %s2889_s7 = inlined_call_operand.vmem [shape: f32[1,32], index: 7, kind: input, shape index: {}]   ;;  %s2890_s8 = inlined_call_operand.vmem [shape: bf16[32,1280], index: 8, kind: input, shape index: {}]   ;;  %s2891_s9 = inlined_call_operand.vmem [shape: f32[1,1280], index: 9, kind: input, shape index: {}]   ;;  %s2892_s10 = inlined_call_operand.vmem [shape: bf16[32,1280], index: 10, kind: input, shape index: {}]   ;;  %s2893_s11 = inlined_call_operand.vmem [shape: f32[1,32], index: 11, kind: input, shape index: {}]   ;;  %s2894_s12 = inlined_call_operand.vmem [shape: f32[1,32], index: 12, kind: input, shape index: {}]   ;;  %s2895_s13 = inlined_call_operand.vmem [shape: f32[1,32], index: 13, kind: input, shape index: {}]   ;;  %s2896_s14 = inlined_call_operand.hbm [shape: f32[2,8,32], index: 14, kind: output, shape index: {}]  }
   0x1   :  { %v2258_v0 = vld [vmem:[%s2884_s2 + $0x8] sm:$0xff]   ;;  %2103 = vmatprep.subr.bf16.mxu0 %v2384_v1  ;;  %v2259_v2 = vld [vmem:[%s2884_s2] sm:$0xff]   ;;  %2111 = vmatprep.subr.bf16.mxu1 %v2384_v1 }
   0x2   :  { %2104 = vmatpush3.bf16.msra.mxu0 %v2258_v0  ;;  %2107 = vmatprep.mubr.msk.bf16.mxu0 %vm2385_vm0, %v2384_v1  ;;  %v49_v3 = vld [vmem:[%s2882_s0] sm:$0xff]  ;;  %v50_v4 = vld [vmem:[%s2882_s0 + $0x8] sm:$0xff] }
   0x3   :  { %v51_v5 = vld [vmem:[%s2883_s1] sm:$0xff]  ;;  %2105 = vmatprep.subr.bf16.mxu0 %v2384_v1  ;;  %2113 = vmatprep.mubr.msk.bf16.mxu1 %vm2385_vm0, %v2384_v1 }
   0x4   :  { %v2492_v6 = vadd.f32 %v51_v5, %v49_v3  ;;  %v2494_v7 = vadd.f32 %v51_v5, %v50_v4 }
   0x6   :  { %v54_v8 = vpack.c.bf16 %v2494_v7, %v2492_v6  ;;  %2106 = vmatpush3.bf16.msra.mxu0 %v2259_v2 }
   0x7   :  { %2117 = vmatprep.subr.bf16.mxu0 %v2384_v1 }
   0x9   :  { %2108 = vmatmul.mubr.msk.bf16.vlgmr.msra.gmra.mxu0 %vm78_vm1, %v54_v8 }
   0xa   :  { %2119 = vmatprep.mubr.msk.bf16.mxu0 %vm2385_vm0, %v2384_v1 }
   0xb   :  { %19 = vsyncpa [#allocation3], 0  ;;  %v1991_v10 = vld [vmem:[%s2885_s3] ss:$0 sm:$0xff]  ;;  %s2386_s2 = smov 104   ;;  %s2387_s23 = smov 120  }
   0xc   :  { %s2388_s24 = smov 96   ;;  %s2389_s25 = smov 112   ;;  %vm154_vm2 = vcmask 64512   ;;  %vm645_vm3 = vcmask 1043456   ;;  %vm1051_vm4 = vcmask 130048   ;;  %vm1054_vm5 = vcmask 195584  }
   0xd   :  { %s2390_s3 = smov 64   ;;  %s2391_s26 = smov 8  }
   0xe   :  { %s2392_s15 = smov 16   ;;  %s2393_s16 = smov 24  }
   0xf   :  { %s2395_s17 = smov [#allocation2]  }
  0xc9   :  { %v116_v9 = vpop.f32.mrf.mxu0 }
  0xca   :  { %v117_v13 = vadd.f32 %v1991_v10, %v116_v9 }
  0xcb   :  { %v2109_v11 = vpop.f32.mrf.mxu0 }
  0xcc   :  { %v143_v17 = vpack.c.bf16 %v117_v13, %v117_v13 }
  0xcd   :  { %v119_v12 = vpop.f32.mrf.mxu0 }
  0xce   :  { %v120_v14 = vadd.f32 %v1991_v10, %v119_v12 }
  0xcf   :  { %v2110_v15 = vpop.f32.mrf.mxu0 }
  0xd0   :  { %v2238_v16 = vpack.i.bf16 %v120_v14, %v117_v13  ;;  %v144_v18 = vpack.c.bf16 %v120_v14, %v120_v14 }
  0xd2   :  { %2239 = vrot.lane.b32.xlu1 %v2238_v16, %s2386_s2  ;;  %2229 = vrot.lane.b32.xlu0 %v2238_v16, %s2387_s23 }
  0xd6   :  { %152 = vrot.lane.b32.xlu1 %v143_v17, %s2388_s24  ;;  %2234 = vrot.lane.b32.xlu0 %v2238_v16, %s2389_s25 }
  0xda   :  { %202 = vrot.lane.b32.xlu0 %v144_v18, %s2388_s24 }
 0x144   :  { %v2240_v19 = vpop.permute.xlu1 %2239  ;;  %v2230_v20 = vpop.permute.xlu0 %2229 }
 0x145   :  { %v2232_v21 = vunpack.i.h.bf16 %v2230_v20  ;;  %v2231_v22 = vunpack.i.l.bf16 %v2230_v20  ;;  %v2241_v30 = vunpack.i.l.bf16 %v2240_v19  ;;  %v2242_v33 = vunpack.i.h.bf16 %v2240_v19 }
 0x147   :  { %v2509_v23 = vpack.c.bf16 %v2232_v21, %v2232_v21  ;;  %v2511_v24 = vpack.c.bf16 %v2231_v22, %v2231_v22  ;;  %v2528_v36 = vpack.c.bf16 %v2241_v30, %v2241_v30  ;;  %v2531_v37 = vpack.c.bf16 %v2242_v33, %v2242_v33 }
 0x148   :  { %v153_v25 = vpop.permute.xlu1 %152  ;;  %v2235_v26 = vpop.permute.xlu0 %2234 }
 0x149   :  { %v2237_v27 = vunpack.i.h.bf16 %v2235_v26  ;;  %v2236_v28 = vunpack.i.l.bf16 %v2235_v26  ;;  %251 = vrot.lane.b32.xlu1 %v2511_v24, %s2388_s24  ;;  %300 = vrot.lane.b32.xlu0 %v2509_v23, %s2388_s24  ;;  %v159_v29 = vsel %vm154_vm2, %v153_v25, 0 }
 0x14a   :  { %2112 = vmatpush3.bf16.xpose.msra.mxu1 %v159_v29 }
 0x14b   :  { %v2518_v31 = vpack.c.bf16 %v2237_v27, %v2237_v27  ;;  %v2520_v32 = vpack.c.bf16 %v2236_v28, %v2236_v28  ;;  %2123 = vmatprep.subr.bf16.mxu1 %v2384_v1 }
 0x14c   :  { %v203_v34 = vpop.permute.xlu0 %202 }
 0x14d   :  { %v208_v35 = vsel %vm154_vm2, %v203_v34, 0  ;;  %349 = vrot.lane.b32.xlu1 %v2520_v32, %s2388_s24  ;;  %398 = vrot.lane.b32.xlu0 %v2518_v31, %s2388_s24 }
 0x14e   :  { %2118 = vmatpush3.bf16.xpose.msra.mxu0 %v208_v35 }
 0x14f   :  { %2129 = vmatprep.subr.bf16.mxu0 %v2384_v1 }
 0x151   :  { %2114 = vmatmul.mubr.msk.bf16.vlgmr.msra.gmra.mxu1 %vm154_vm2, %v143_v17  ;;  %447 = vrot.lane.b32.xlu1 %v2528_v36, %s2388_s24 }
 0x152   :  { %496 = vrot.lane.b32.xlu0 %v2531_v37, %s2388_s24  ;;  %2125 = vmatprep.mubr.msk.bf16.mxu1 %vm2385_vm0, %v2384_v1 }
 0x155   :  { %689 = vrot.lane.b32.xlu1 %v144_v18, %s2390_s3  ;;  %2120 = vmatmul.mubr.msk.bf16.vlgmr.msra.gmra.mxu0 %vm154_vm2, %v144_v18 }
 0x156   :  { %640 = vrot.lane.b32.xlu0 %v143_v17, %s2390_s3  ;;  %2131 = vmatprep.mubr.msk.bf16.mxu0 %vm2385_vm0, %v2384_v1 }
 0x1bb   :  { %v252_v38 = vpop.permute.xlu1 %251  ;;  %v301_v39 = vpop.permute.xlu0 %300 }
 0x1bc   :  { %v257_v40 = vsel %vm154_vm2, %v252_v38, 0  ;;  %v306_v41 = vsel %vm154_vm2, %v301_v39, 0 }
 0x1bd   :  { %2124 = vmatpush3.bf16.xpose.msra.mxu1 %v257_v40  ;;  %2130 = vmatpush3.bf16.xpose.msra.mxu0 %v306_v41 }
 0x1be   :  { %2135 = vmatprep.subr.bf16.mxu1 %v2384_v1  ;;  %2141 = vmatprep.subr.bf16.mxu0 %v2384_v1 }
 0x1bf   :  { %v350_v42 = vpop.permute.xlu1 %349  ;;  %v399_v43 = vpop.permute.xlu0 %398 }
 0x1c0   :  { %v355_v44 = vsel %vm154_vm2, %v350_v42, 0  ;;  %v404_v45 = vsel %vm154_vm2, %v399_v43, 0 }
 0x1c3   :  { %v448_v46 = vpop.permute.xlu1 %447 }
 0x1c4   :  { %2126 = vmatmul.mubr.msk.bf16.vlgmr.msra.gmra.mxu1 %vm154_vm2, %v2511_v24  ;;  %2132 = vmatmul.mubr.msk.bf16.vlgmr.msra.gmra.mxu0 %vm154_vm2, %v2509_v23  ;;  %v497_v47 = vpop.permute.xlu0 %496  ;;  %v453_v48 = vsel %vm154_vm2, %v448_v46, 0 }
 0x1c5   :  { %2136 = vmatpush3.bf16.xpose.msra.mxu1 %v355_v44  ;;  %2142 = vmatpush3.bf16.xpose.msra.mxu0 %v404_v45  ;;  %v502_v49 = vsel %vm154_vm2, %v497_v47, 0 }
 0x1c6   :  { %2137 = vmatprep.mubr.msk.bf16.mxu1 %vm2385_vm0, %v2384_v1  ;;  %2143 = vmatprep.mubr.msk.bf16.mxu0 %vm2385_vm0, %v2384_v1 }
 0x1c7   :  { %2147 = vmatprep.subr.bf16.mxu1 %v2384_v1  ;;  %2153 = vmatprep.subr.bf16.mxu0 %v2384_v1  ;;  %v690_v50 = vpop.permute.xlu1 %689 }
 0x1c8   :  { %v641_v51 = vpop.permute.xlu0 %640  ;;  %v695_v52 = vsel %vm645_vm3, %v690_v50, 0 }
 0x1c9   :  { %v647_v53 = vsel %vm645_vm3, %v641_v51, 0 }
 0x1cc   :  { %2138 = vmatmul.mubr.msk.bf16.vlgmr.msra.gmra.mxu1 %vm154_vm2, %v2520_v32  ;;  %2144 = vmatmul.mubr.msk.bf16.vlgmr.msra.gmra.mxu0 %vm154_vm2, %v2518_v31 }
 0x1cd   :  { %2148 = vmatpush3.bf16.xpose.msra.mxu1 %v453_v48  ;;  %2154 = vmatpush3.bf16.xpose.msra.mxu0 %v502_v49 }
 0x1ce   :  { %2149 = vmatprep.mubr.msk.bf16.mxu1 %vm2385_vm0, %v2384_v1  ;;  %2155 = vmatprep.mubr.msk.bf16.mxu0 %vm2385_vm0, %v2384_v1 }
 0x1cf   :  { %2159 = vmatprep.subr.bf16.mxu1 %v2384_v1  ;;  %2165 = vmatprep.subr.bf16.mxu0 %v2384_v1 }
 0x1d4   :  { %2150 = vmatmul.mubr.msk.bf16.vlgmr.msra.gmra.mxu1 %vm154_vm2, %v2528_v36  ;;  %2156 = vmatmul.mubr.msk.bf16.vlgmr.msra.gmra.mxu0 %vm154_vm2, %v2531_v37 }
 0x1d5   :  { %2160 = vmatpush3.bf16.msra.mxu1 %v647_v53  ;;  %2166 = vmatpush3.bf16.msra.mxu0 %v695_v52 }
 0x1d6   :  { %2161 = vmatprep.mubr.msk.bf16.mxu1 %vm2385_vm0, %v2384_v1  ;;  %2167 = vmatprep.mubr.msk.bf16.mxu0 %vm2385_vm0, %v2384_v1 }
 0x1d7   :  { %2171 = vmatprep.subr.bf16.mxu1 %v2384_v1  ;;  %2177 = vmatprep.subr.bf16.mxu0 %v2384_v1 }
 0x211   :  { %v195_v54 = vpop.f32.mrf.mxu1 }
 0x212   :  { %v544_v55 = vsel %vm154_vm2, %v195_v54, -inf }
 0x213   :  { %v2115_v56 = vpop.f32.mrf.mxu1  ;;  %545 = vmax.xlane.f32.xlu1 %v544_v55 }
 0x215   :  { %v198_v57 = vpop.f32.mrf.mxu1  ;;  %v244_v58 = vpop.f32.mrf.mxu0 }
 0x216   :  { %v547_v59 = vsel %vm154_vm2, %v244_v58, -inf }
 0x217   :  { %v2116_v60 = vpop.f32.mrf.mxu1  ;;  %548 = vmax.xlane.f32.xlu0 %v547_v59  ;;  %v2121_v61 = vpop.f32.mrf.mxu0 }
 0x219   :  { %v247_v62 = vpop.f32.mrf.mxu0 }
 0x21b   :  { %v2122_v63 = vpop.f32.mrf.mxu0 }
 0x284   :  { %v293_v0 = vpop.f32.mrf.mxu1  ;;  %v342_v2 = vpop.f32.mrf.mxu0 }
 0x285   :  { %v550_v3 = vsel %vm154_vm2, %v293_v0, -inf  ;;  %v553_v4 = vsel %vm154_vm2, %v342_v2, -inf }
 0x286   :  { %v2127_v5 = vpop.f32.mrf.mxu1  ;;  %551 = vmax.xlane.f32.xlu0 %v550_v3  ;;  %554 = vmax.xlane.f32.xlu1 %v553_v4  ;;  %v2133_v8 = vpop.f32.mrf.mxu0 }
 0x288   :  { %v296_v9 = vpop.f32.mrf.mxu1  ;;  %v345_v10 = vpop.f32.mrf.mxu0 }
 0x28a   :  { %v2128_v11 = vpop.f32.mrf.mxu1  ;;  %v2134_v12 = vpop.f32.mrf.mxu0 }
 0x28c   :  { %v2589_v13 = vpop.f32.mrf.mxu1  ;;  %v440_v14 = vpop.f32.mrf.mxu0 }
 0x28d   :  { %v556_v15 = vsel %vm154_vm2, %v2589_v13, -inf  ;;  %v559_v16 = vsel %vm154_vm2, %v440_v14, -inf }
 0x28e   :  { %v2139_v17 = vpop.f32.mrf.mxu1  ;;  %557 = vmax.xlane.f32.xlu0 %v556_v15  ;;  %560 = vmax.xlane.f32.xlu1 %v559_v16  ;;  %v2145_v18 = vpop.f32.mrf.mxu0 }
 0x290   :  { %v394_v19 = vpop.f32.mrf.mxu1  ;;  %v443_v20 = vpop.f32.mrf.mxu0 }
 0x292   :  { %v2140_v21 = vpop.f32.mrf.mxu1  ;;  %v2146_v22 = vpop.f32.mrf.mxu0 }
 0x294   :  { %v2594_v25 = vpop.f32.mrf.mxu1  ;;  %v538_v26 = vpop.f32.mrf.mxu0 }
 0x295   :  { %v562_v27 = vsel %vm154_vm2, %v2594_v25, -inf  ;;  %v565_v28 = vsel %vm154_vm2, %v538_v26, -inf }
 0x296   :  { %v2151_v29 = vpop.f32.mrf.mxu1  ;;  %563 = vmax.xlane.f32.xlu0 %v562_v27  ;;  %566 = vmax.xlane.f32.xlu1 %v565_v28  ;;  %v2157_v30 = vpop.f32.mrf.mxu0 }
 0x298   :  { %v492_v33 = vpop.f32.mrf.mxu1  ;;  %v541_v34 = vpop.f32.mrf.mxu0 }
 0x29a   :  { %v2152_v35 = vpop.f32.mrf.mxu1  ;;  %v2158_v38 = vpop.f32.mrf.mxu0 }
 0x29c   :  { %v546_v39 = vpop.xlane.xlu1 %545 }
 0x29d   :  { %v568_v41 = vsub.f32 %v195_v54, %v546_v39 }
 0x29f   :  { %v576_v43 = vmul.f32 1.442695, %v568_v41 }
 0x2a0   :  { %v549_v40 = vpop.xlane.xlu0 %548 }
 0x2a1   :  { %v569_v42 = vsub.f32 %v244_v58, %v549_v40  ;;  %2322 = vpow2.f32 %v576_v43 }
 0x2a3   :  { %v578_v44 = vmul.f32 1.442695, %v569_v42 }
 0x2a5   :  { %2324 = vpow2.f32 %v578_v44 }
 0x2a7   :  { %737 = vrot.lane.b32.xlu1 %v2511_v24, %s2390_s3 }
 0x2ac   :  { %785 = vrot.lane.b32.xlu0 %v2509_v23, %s2390_s3 }
 0x2ae   :  { %v2323_v45 = vpop.eup %2322 }
 0x2af   :  { %v592_v47 = vsel %vm154_vm2, %v2323_v45, 0.0 }
 0x2b2   :  { %v2325_v46 = vpop.eup %2324 }
 0x2b3   :  { %v595_v48 = vsel %vm154_vm2, %v2325_v46, 0.0 }
 0x2cb   :  { %593 = vadd.xlane.f32.xlu0 %v592_v47  ;;  %596 = vadd.xlane.f32.xlu1 %v595_v48 }
 0x2dc   :  { %833 = vrot.lane.b32.xlu1 %v2520_v32, %s2390_s3 }
 0x30f   :  { %v552_v23 = vpop.xlane.xlu0 %551  ;;  %v555_v24 = vpop.xlane.xlu1 %554 }
 0x310   :  { %v570_v49 = vsub.f32 %v293_v0, %v552_v23  ;;  %v571_v50 = vsub.f32 %v342_v2, %v555_v24 }
 0x312   :  { %v580_v51 = vmul.f32 1.442695, %v570_v49  ;;  %v582_v52 = vmul.f32 1.442695, %v571_v50 }
 0x314   :  { %2326 = vpow2.f32 %v580_v51 }
 0x315   :  { %2328 = vpow2.f32 %v582_v52 }
 0x317   :  { %v561_v53 = vpop.xlane.xlu1 %560  ;;  %v558_v3 = vpop.xlane.xlu0 %557 }
 0x318   :  { %v573_v54 = vsub.f32 %v440_v14, %v561_v53  ;;  %v572_v4 = vsub.f32 %v2589_v13, %v558_v3 }
 0x31a   :  { %v586_v55 = vmul.f32 1.442695, %v573_v54  ;;  %v584_v8 = vmul.f32 1.442695, %v572_v4 }
 0x31c   :  { %2330 = vpow2.f32 %v586_v55 }
 0x31f   :  { %v567_v56 = vpop.xlane.xlu1 %566  ;;  %v564_v5 = vpop.xlane.xlu0 %563 }
 0x320   :  { %v575_v57 = vsub.f32 %v538_v26, %v567_v56  ;;  %v574_v9 = vsub.f32 %v2594_v25, %v564_v5 }
 0x321   :  { %v2327_v58 = vpop.eup %2326 }
 0x322   :  { %v2329_v59 = vpop.eup %2328  ;;  %v590_v60 = vmul.f32 1.442695, %v575_v57  ;;  %v598_v61 = vsel %vm154_vm2, %v2327_v58, 0.0  ;;  %v588_v10 = vmul.f32 1.442695, %v574_v9 }
 0x323   :  { %599 = vadd.xlane.f32.xlu0 %v598_v61  ;;  %v601_v32 = vsel %vm154_vm2, %v2329_v59, 0.0  ;;  %v786_v11 = vpop.permute.xlu0 %785  ;;  %v738_v12 = vpop.permute.xlu1 %737 }
 0x324   :  { %602 = vadd.xlane.f32.xlu1 %v601_v32  ;;  %2332 = vpow2.f32 %v590_v60  ;;  %v743_v25 = vsel %vm645_vm3, %v738_v12, 0  ;;  %v791_v26 = vsel %vm645_vm3, %v786_v11, 0 }
 0x325   :  { %2334 = vpow2.f32 %v584_v8 }
 0x326   :  { %2336 = vpow2.f32 %v588_v10 }
 0x329   :  { %v2609_v62 = vpop.eup %2330 }
 0x32a   :  { %v607_v63 = vsel %vm154_vm2, %v2609_v62, 0.0 }
 0x32b   :  { %608 = vadd.xlane.f32.xlu1 %v607_v63 }
 0x331   :  { %v2613_v0 = vpop.eup %2332 }
 0x332   :  { %v613_v2 = vsel %vm154_vm2, %v2613_v0, 0.0  ;;  %v2623_v14 = vpop.eup %2334 }
 0x333   :  { %614 = vadd.xlane.f32.xlu1 %v613_v2  ;;  %v2627_v13 = vpop.eup %2336 }
 0x339   :  { %881 = vrot.lane.b32.xlu0 %v2518_v31, %s2390_s3  ;;  %v604_v31 = vsel %vm154_vm2, %v2623_v14, 0.0 }
 0x344   :  { %929 = vrot.lane.b32.xlu1 %v2528_v36, %s2390_s3  ;;  %v610_v36 = vsel %vm154_vm2, %v2627_v13, 0.0 }
 0x354   :  { %v594_v15 = vpop.xlane.xlu0 %593  ;;  %v597_v16 = vpop.xlane.xlu1 %596 }
 0x355   :  { %2338 = vrcp.f32 %v594_v15 }
 0x356   :  { %2340 = vrcp.f32 %v597_v16 }
 0x358   :  { %605 = vadd.xlane.f32.xlu0 %v604_v31  ;;  %v834_v27 = vpop.permute.xlu1 %833 }
 0x359   :  { %v839_v42 = vsel %vm645_vm3, %v834_v27, 0 }
 0x35c   :  { %611 = vadd.xlane.f32.xlu0 %v610_v36 }
 0x362   :  { %v2339_v17 = vpop.eup %2338 }
 0x363   :  { %v2341_v18 = vpop.eup %2340  ;;  %v617_v19 = vmul.f32 %v2339_v17, %v2323_v45  ;;  %v2260_v17 = vld [vmem:[%s2886_s4 + $0x8] sm:$0xff]  }
 0x364   :  { %v619_v20 = vmul.f32 %v2341_v18, %v2325_v46 }
 0x365   :  { %v632_v21 = vpack.c.bf16 %v617_v19, %v617_v19 }
 0x366   :  { %v633_v22 = vpack.c.bf16 %v619_v20, %v619_v20 }
 0x367   :  { %2162 = vmatmul.mubr.msk.bf16.vlgmr.msra.gmra.mxu1 %vm154_vm2, %v632_v21 }
 0x368   :  { %2168 = vmatmul.mubr.msk.bf16.vlgmr.msra.gmra.mxu0 %vm154_vm2, %v633_v22  ;;  %2172 = vmatpush3.bf16.msra.mxu1 %v743_v25  ;;  %v2261_v25 = vld [vmem:[%s2886_s4] sm:$0xff]  }
 0x369   :  { %2178 = vmatpush3.bf16.msra.mxu0 %v791_v26  ;;  %2173 = vmatprep.mubr.msk.bf16.mxu1 %vm2385_vm0, %v2384_v1 }
 0x36a   :  { %2179 = vmatprep.mubr.msk.bf16.mxu0 %vm2385_vm0, %v2384_v1  ;;  %2183 = vmatprep.subr.bf16.mxu1 %v2384_v1 }
 0x36b   :  { %2189 = vmatprep.subr.bf16.mxu0 %v2384_v1 }
 0x372   :  { %977 = vrot.lane.b32.xlu0 %v2531_v37, %s2390_s3 }
 0x3ac   :  { %v600_v28 = vpop.xlane.xlu0 %599 }
 0x3ad   :  { %2342 = vrcp.f32 %v600_v28  ;;  %v603_v29 = vpop.xlane.xlu1 %602 }
 0x3ae   :  { %2344 = vrcp.f32 %v603_v29 }
 0x3b0   :  { %v882_v39 = vpop.permute.xlu0 %881 }
 0x3b1   :  { %v887_v37 = vsel %vm645_vm3, %v882_v39, 0 }
 0x3b4   :  { %v609_v30 = vpop.xlane.xlu1 %608 }
 0x3b5   :  { %2346 = vrcp.f32 %v609_v30 }
 0x3ba   :  { %v2343_v33 = vpop.eup %2342 }
 0x3bb   :  { %v2345_v34 = vpop.eup %2344  ;;  %v621_v35 = vmul.f32 %v2343_v33, %v2327_v58 }
 0x3bc   :  { %v623_v38 = vmul.f32 %v2345_v34, %v2329_v59  ;;  %v615_v46 = vpop.xlane.xlu1 %614 }
 0x3bd   :  { %v634_v40 = vpack.c.bf16 %v621_v35, %v621_v35  ;;  %2348 = vrcp.f32 %v615_v46 }
 0x3be   :  { %v635_v41 = vpack.c.bf16 %v623_v38, %v623_v38 }
 0x3bf   :  { %2174 = vmatmul.mubr.msk.bf16.vlgmr.msra.gmra.mxu1 %vm154_vm2, %v634_v40 }
 0x3c0   :  { %2180 = vmatmul.mubr.msk.bf16.vlgmr.msra.gmra.mxu0 %vm154_vm2, %v635_v41  ;;  %2184 = vmatpush3.bf16.msra.mxu1 %v839_v42  ;;  %v930_v54 = vpop.permute.xlu1 %929 }
 0x3c1   :  { %2190 = vmatpush3.bf16.msra.mxu0 %v887_v37  ;;  %2191 = vmatprep.mubr.msk.bf16.mxu0 %vm2385_vm0, %v2384_v1  ;;  %v935_v57 = vsel %vm645_vm3, %v930_v54, 0 }
 0x3c2   :  { %2201 = vmatprep.subr.bf16.mxu0 %v2384_v1  ;;  %2185 = vmatprep.mubr.msk.bf16.mxu1 %vm2385_vm0, %v2384_v1  ;;  %v2347_v43 = vpop.eup %2346 }
 0x3c3   :  { %2195 = vmatprep.subr.bf16.mxu1 %v2384_v1  ;;  %v627_v44 = vmul.f32 %v2347_v43, %v2609_v62 }
 0x3c5   :  { %v637_v45 = vpack.c.bf16 %v627_v44, %v627_v44 }
 0x3c8   :  { %2192 = vmatmul.mubr.msk.bf16.vlgmr.msra.gmra.mxu0 %vm154_vm2, %v637_v45 }
 0x3c9   :  { %2203 = vmatprep.mubr.msk.bf16.mxu0 %vm2385_vm0, %v2384_v1 }
 0x3ca   :  { %v2349_v48 = vpop.eup %2348 }
 0x3cb   :  { %v631_v24 = vmul.f32 %v2349_v48, %v2613_v0 }
 0x3cd   :  { %v639_v51 = vpack.c.bf16 %v631_v24, %v631_v24 }
 0x3e1   :  { %v606_v47 = vpop.xlane.xlu0 %605 }
 0x3e2   :  { %2350 = vrcp.f32 %v606_v47 }
 0x3e5   :  { %v612_v23 = vpop.xlane.xlu0 %611 }
 0x3e6   :  { %2352 = vrcp.f32 %v612_v23 }
 0x3e9   :  { %v978_v49 = vpop.permute.xlu0 %977 }
 0x3ea   :  { %v983_v50 = vsel %vm645_vm3, %v978_v49, 0 }
 0x3eb   :  { %2202 = vmatpush3.bf16.msra.mxu0 %v983_v50 }
 0x3ee   :  { %2204 = vmatmul.mubr.msk.bf16.vlgmr.msra.gmra.mxu0 %vm154_vm2, %v639_v51  ;;  %v2011_v51 = vld [vmem:[%s2887_s5] ss:$0 sm:$0xff]  ;;  %s1980_s5 = sshll.u32 %s2395_s17, 4  ;;  %s1981_s5 = int_to_ptr.vmem [resolvable:$true] %s1980_s5 }
 0x3ef   :  { %v2351_v52 = vpop.eup %2350  ;;  %s2362_s18 = scalar_lea.vmem %s1981_s5, 256  ;;  %p2367_p1 = scmp.lt.s32.totalorder %s1981_s5, %s1981_s5 }
 0x3f0   :  { %v625_v53 = vmul.f32 %v2351_v52, %v2623_v14  ;;  %p2363_p0 = scmp.ne.s32.totalorder %s1981_s5, %s2362_s18  ;;  %p2368_p2 = scmp.lt.s32.totalorder %s2362_s18, %s2362_s18 }
 0x3f2   :  { %v636_v55 = vpack.c.bf16 %v625_v53, %v625_v53  ;;  %p2369_p3 = por %p2368_p2, %p2367_p1 }
 0x3f3   :  { %v2353_v56 = vpop.eup %2352 }
 0x3f4   :  { %2186 = vmatmul.mubr.msk.bf16.vlgmr.msra.gmra.mxu1 %vm154_vm2, %v636_v55  ;;  %v629_v58 = vmul.f32 %v2353_v56, %v2627_v13  ;;  %p2370_p4 = pnand %p2369_p3, %p2363_p0 }
 0x3f5   :  { %2196 = vmatpush3.bf16.msra.mxu1 %v935_v57  ;;  %2197 = vmatprep.mubr.msk.bf16.mxu1 %vm2385_vm0, %v2384_v1 }
 0x3f6   :  { %2207 = vmatprep.subr.bf16.mxu1 %v2384_v1  ;;  %v638_v59 = vpack.c.bf16 %v629_v58, %v629_v58 }
 0x3fc   :  { %2198 = vmatmul.mubr.msk.bf16.vlgmr.msra.gmra.mxu1 %vm154_vm2, %v638_v59 }
 0x3fd   :  { %2211 = vmatprep.mubr.msk.bf16.mxu1 %vm2385_vm0, %v2384_v1  ;;  %2208 = vmatpush3.bf16.msra.mxu1 %v2260_v17 }
 0x3fe   :  { %2209 = vmatprep.subr.bf16.mxu1 %v2384_v1 }
 0x401   :  { %2210 = vmatpush3.bf16.msra.mxu1 %v2261_v25 }
 0x427   :  { %v683_v60 = vpop.f32.mrf.mxu1 }
 0x428   :  { %v731_v61 = vpop.f32.mrf.mxu0 }
 0x429   :  { %v2163_v32 = vpop.f32.mrf.mxu1 }
 0x42a   :  { %v2169_v62 = vpop.f32.mrf.mxu0 }
 0x42b   :  { %v686_v63 = vpop.f32.mrf.mxu1 }
 0x42c   :  { %v734_v0 = vpop.f32.mrf.mxu0 }
 0x42d   :  { %v2164_v2 = vpop.f32.mrf.mxu1 }
 0x42e   :  { %v2170_v3 = vpop.f32.mrf.mxu0 }
 0x47f   :  { %v779_v4 = vpop.f32.mrf.mxu1 }
 0x480   :  { %v827_v5 = vpop.f32.mrf.mxu0 }
 0x481   :  { %v2243_v8 = vpack.i.bf16 %v827_v5, %v779_v4  ;;  %v2175_v9 = vpop.f32.mrf.mxu1 }
 0x482   :  { %v2181_v10 = vpop.f32.mrf.mxu0  ;;  %v2264_v9 = vld [vmem:[%s2890_s8 + $0x54] ss:$40 sps:$4 sm:$0xff]  }
 0x483   :  { %2244 = vrot.lane.b32.xlu1 %v2243_v8, %s2391_s26  ;;  %v782_v11 = vpop.f32.mrf.mxu1  ;;  %v2265_v10 = vld [vmem:[%s2890_s8 + $0x58] ss:$40 sps:$4 sm:$0xff]   ;;  %1362 = vmatprep.subr.bf16.mxu0 %v2264_v9 }
 0x484   :  { %v830_v12 = vpop.f32.mrf.mxu0  ;;  %v2267_v11 = vld [vmem:[%s2890_s8 + $0x5c] ss:$40 sps:$4 sm:$0xff]  }
 0x485   :  { %v2176_v14 = vpop.f32.mrf.mxu1  ;;  %v2270_v12 = vld [vmem:[%s2890_s8 + $0x4] ss:$40 sps:$4 sm:$0xff]   ;;  %1405 = vmatprep.subr.bf16.mxu1 %v2267_v11 }
 0x486   :  { %v2182_v15 = vpop.f32.mrf.mxu0  ;;  %v2273_v14 = vld [vmem:[%s2890_s8 + $0xc] ss:$40 sps:$4 sm:$0xff]  }
 0x487   :  { %v2268_v15 = vld [vmem:[%s2890_s8] ss:$40 sps:$4 sm:$0xff]  }
 0x488   :  { %v923_v16 = vpop.f32.mrf.mxu0 }
 0x48a   :  { %v2193_v31 = vpop.f32.mrf.mxu0 }
 0x48b   :  { %v2394_v31 = vmov 0  }
 0x48c   :  { %v926_v13 = vpop.f32.mrf.mxu0  ;;  %1382 = vmatprep.mubr.bf16.mxu0 %v2394_v31 }
 0x48d   :  { %v2276_v13 = vld [vmem:[%s2890_s8 + $0x64] ss:$40 sps:$4 sm:$0xff]  }
 0x48e   :  { %v2194_v36 = vpop.f32.mrf.mxu0 }
 0x48f   :  { %v2279_v36 = vld [vmem:[%s2890_s8 + $0x6c] ss:$40 sps:$4 sm:$0xff]  }
 0x4ae   :  { %v1019_v18 = vpop.f32.mrf.mxu0 }
 0x4b0   :  { %v2205_v19 = vpop.f32.mrf.mxu0 }
 0x4b2   :  { %v1022_v20 = vpop.f32.mrf.mxu0 }
 0x4b4   :  { %v875_v21 = vpop.f32.mrf.mxu1  ;;  %v2206_v22 = vpop.f32.mrf.mxu0 }
 0x4b5   :  { %v2248_v26 = vpack.i.bf16 %v923_v16, %v875_v21  ;;  %v2271_v16 = vld [vmem:[%s2890_s8 + $0x8] ss:$40 sps:$4 sm:$0xff]  }
 0x4b6   :  { %v2187_v27 = vpop.f32.mrf.mxu1 }
 0x4b7   :  { %2249 = vrot.lane.b32.xlu0 %v2248_v26, %s2392_s15  ;;  %v2015_v27 = vld [vmem:[%s2888_s6] ss:$0 sm:$0xff] }
 0x4b8   :  { %v878_v28 = vpop.f32.mrf.mxu1 }
 0x4ba   :  { %v2188_v29 = vpop.f32.mrf.mxu1 }
 0x4bc   :  { %v971_v30 = vpop.f32.mrf.mxu1 }
 0x4bd   :  { %v2253_v33 = vpack.i.bf16 %v1019_v18, %v971_v30 }
 0x4be   :  { %v2199_v34 = vpop.f32.mrf.mxu1 }
 0x4bf   :  { %2254 = vrot.lane.b32.xlu1 %v2253_v33, %s2393_s16  ;;  %v2016_v33 = vld [vmem:[%s2889_s7] ss:$0 sm:$0xff] }
 0x4c0   :  { %v974_v1 = vpop.f32.mrf.mxu1 }
 0x4c2   :  { %v2200_v35 = vpop.f32.mrf.mxu1 }
 0x4f5   :  { %v2245_v38 = vpop.permute.xlu1 %2244 }
 0x4f6   :  { %v2247_v40 = vunpack.i.h.bf16 %v2245_v38  ;;  %v2246_v41 = vunpack.i.l.bf16 %v2245_v38  ;;  %v2274_v38 = vld [vmem:[%s2890_s8 + $0x60] ss:$40 sps:$4 sm:$0xff]  }
 0x4f8   :  { %v1050_v44 = vsel %vm154_vm2, %v731_v61, %v2247_v40  ;;  %v1049_v45 = vsel %vm154_vm2, %v683_v60, %v2246_v41  ;;  %v2282_v41 = vld [vmem:[%s2890_s8 + $0x14] ss:$40 sps:$4 sm:$0xff]  }
 0x529   :  { %v2250_v39 = vpop.permute.xlu0 %2249 }
 0x52a   :  { %v2252_v42 = vunpack.i.h.bf16 %v2250_v39  ;;  %v2251_v37 = vunpack.i.l.bf16 %v2250_v39  ;;  %v2277_v39 = vld [vmem:[%s2890_s8 + $0x68] ss:$40 sps:$4 sm:$0xff]  }
 0x52c   :  { %v1053_v48 = vsel %vm1051_vm4, %v1050_v44, %v2252_v42  ;;  %v1052_v23 = vsel %vm1051_vm4, %v1049_v45, %v2251_v37  ;;  %v2285_v42 = vld [vmem:[%s2890_s8 + $0x1c] ss:$40 sps:$4 sm:$0xff]   ;;  %v2280_v37 = vld [vmem:[%s2890_s8 + $0x10] ss:$40 sps:$4 sm:$0xff]  }
 0x52d   :  { %v2288_v44 = vld [vmem:[%s2890_s8 + $0x74] ss:$40 sps:$4 sm:$0xff]  }
 0x52e   :  { %v2294_v45 = vld [vmem:[%s2892_s10 + $0x54] ss:$40 sps:$4 sm:$0xff]  }
 0x531   :  { %v2255_v43 = vpop.permute.xlu1 %2254 }
 0x532   :  { %v2257_v46 = vunpack.i.h.bf16 %v2255_v43  ;;  %v2256_v47 = vunpack.i.l.bf16 %v2255_v43  ;;  %v2283_v43 = vld [vmem:[%s2890_s8 + $0x18] ss:$40 sps:$4 sm:$0xff]  }
 0x534   :  { %v1056_v24 = vsel %vm1054_vm5, %v1053_v48, %v2257_v46  ;;  %v1055_v49 = vsel %vm1054_vm5, %v1052_v23, %v2256_v47  ;;  %v2286_v46 = vld [vmem:[%s2890_s8 + $0x70] ss:$40 sps:$4 sm:$0xff]   ;;  %v2291_v47 = vld [vmem:[%s2890_s8 + $0x24] ss:$40 sps:$4 sm:$0xff]   ;;  %v2289_v23 = vld [vmem:[%s2890_s8 + $0x20] ss:$40 sps:$4 sm:$0xff]  }
 0x535   :  { %v1057_v50 = vpack.c.bf16 %v1056_v24, %v1055_v49  ;;  %v2292_v48 = vld [vmem:[%s2892_s10 + $0x50] ss:$40 sps:$4 sm:$0xff]   ;;  %v2297_v24 = vld [vmem:[%s2892_s10 + $0x5c] ss:$40 sps:$4 sm:$0xff]  }
 0x536   :  { %v2295_v49 = vld [vmem:[%s2892_s10 + $0x58] ss:$40 sps:$4 sm:$0xff]  }
 0x537   :  { %2212 = vmatmul.mubr.msk.bf16.vlgmr.msra.gmra.mxu1 %vm78_vm1, %v1057_v50  ;;  %v2300_v50 = vld [vmem:[%s2892_s10 + $0x4] ss:$40 sps:$4 sm:$0xff]  }
 0x538   :  { %1406 = vmatpush1.bf16.msra.mxu1 %v2265_v10  ;;  %1425 = vmatprep.mubr.bf16.mxu1 %v2394_v31 }
 0x539   :  { %1407 = vmatprep.subr.bf16.mxu1 %v2273_v14 }
 0x53c   :  { %1408 = vmatpush1.bf16.msra.mxu1 %v2271_v16 }
 0x53d   :  { %1491 = vmatprep.subr.bf16.mxu1 %v2279_v36 }
 0x5f7   :  { %v1118_v52 = vpop.f32.mrf.mxu1 }
 0x5f8   :  { %v1119_v53 = vadd.f32 %v2011_v51, %v1118_v52  ;;  %v2298_v52 = vld [vmem:[%s2892_s10] ss:$40 sps:$4 sm:$0xff]  }
 0x5f9   :  { %v2213_v54 = vpop.f32.mrf.mxu1 }
 0x5fa   :  { %v1125_v55 = vadd.f32 %v1119_v53, %v2492_v6  ;;  %v2301_v53 = vld [vmem:[%s2892_s10 + $0x8] ss:$40 sps:$4 sm:$0xff]   ;;  %v2306_v54 = vld [vmem:[%s2892_s10 + $0x64] ss:$40 sps:$4 sm:$0xff]  }
 0x5fb   :  { %v1121_v56 = vpop.f32.mrf.mxu1 }
 0x5fc   :  { %v1122_v57 = vadd.f32 %v2011_v51, %v1121_v56  ;;  %v1127_v58 = vsel %vm78_vm1, %v1125_v55, 0.0  ;;  %v2303_v51 = vld [vmem:[%s2892_s10 + $0xc] ss:$40 sps:$4 sm:$0xff]   ;;  %v1197_v56 = vlaneseq }
 0x5fd   :  { %1128 = vadd.xlane.f32.xlu0 %v1127_v58  ;;  %v2214_v59 = vpop.f32.mrf.mxu1 }
 0x5fe   :  { %v1126_v60 = vadd.f32 %v1122_v57, %v2494_v7  ;;  %v2262_v7 = vld [vmem:[%s2890_s8 + $0x50] ss:$40 sps:$4 sm:$0xff]   ;;  %v2797_v57 = vshrl.u32 %v1197_v56, 7 }
 0x5ff   :  { %1363 = vmatpush1.bf16.msra.mxu0 %v2262_v7 }
 0x600   :  { %v1130_v61 = vsel %vm78_vm1, %v1126_v60, 0.0  ;;  %1364 = vmatprep.subr.bf16.mxu0 %v2270_v12  ;;  %v1203_v58 = vsub.s32 1, %v2797_v57  ;;  %v1211_v59 = vsub.s32 3, %v2797_v57  ;;  %v1219_v9 = vsub.s32 5, %v2797_v57 }
 0x601   :  { %1131 = vadd.xlane.f32.xlu1 %v1130_v61  ;;  %v1207_v61 = vsub.s32 2, %v2797_v57  ;;  %v1227_v10 = vsub.s32 7, %v2797_v57 }
 0x603   :  { %1365 = vmatpush1.bf16.msra.mxu0 %v2268_v15 }
 0x604   :  { %1448 = vmatprep.subr.bf16.mxu0 %v2276_v13 }
 0x686   :  { %v1129_v32 = vpop.xlane.xlu0 %1128 }
 0x687   :  { %v1134_v62 = vmul.f32 0.03125, %v1129_v32  ;;  %v2806_v32 = vld [vmem:[%s2891_s9] sm:$0xff] }
 0x689   :  { %v1136_v63 = vsub.f32 %v1125_v55, %v1134_v62  ;;  %v2309_v55 = vld [vmem:[%s2892_s10 + $0x6c] ss:$40 sps:$4 sm:$0xff]  }
 0x68a   :  { %v1132_v0 = vpop.xlane.xlu1 %1131 }
 0x68b   :  { %v1135_v2 = vmul.f32 0.03125, %v1132_v0  ;;  %v1138_v3 = vmul.f32 %v1136_v63, %v1136_v63  ;;  %v1204_v0 = vrot.slane %v2806_v32, %v1203_v58 }
 0x68d   :  { %v1137_v4 = vsub.f32 %v1126_v60, %v1135_v2  ;;  %v1140_v6 = vsel %vm78_vm1, %v1138_v3, 0.0  ;;  %v1199_v60 = vsub.s32 0, %v2797_v57  ;;  %v1212_v2 = vrot.slane %v2806_v32, %v1211_v59 }
 0x68e   :  { %1141 = vadd.xlane.f32.xlu0 %v1140_v6 }
 0x68f   :  { %v1139_v5 = vmul.f32 %v1137_v4, %v1137_v4  ;;  %v1200_v3 = vrot.slane %v2806_v32, %v1199_v60 }
 0x691   :  { %v1143_v8 = vsel %vm78_vm1, %v1139_v5, 0.0 }
 0x692   :  { %1144 = vadd.xlane.f32.xlu0 %v1143_v8 }
 0x717   :  { %v1142_v17 = vpop.xlane.xlu0 %1141 }
 0x718   :  { %v1146_v18 = vmul.f32 0.03125, %v1142_v17 }
 0x71a   :  { %v1148_v19 = vadd.f32 1e-05, %v1146_v18 }
 0x71b   :  { %v1145_v20 = vpop.xlane.xlu0 %1144 }
 0x71c   :  { %2354 = vrsqrt.f32 %v1148_v19  ;;  %v1147_v21 = vmul.f32 0.03125, %v1145_v20 }
 0x71e   :  { %v1149_v22 = vadd.f32 1e-05, %v1147_v21 }
 0x720   :  { %2356 = vrsqrt.f32 %v1149_v22 }
 0x729   :  { %v2355_v25 = vpop.eup %2354 }
 0x72a   :  { %v1152_v26 = vmul.f32 %v2355_v25, %v1136_v63  ;;  %v1220_v25 = vrot.slane %v2806_v32, %v1219_v9 }
 0x72c   :  { %v1161_v30 = vmul.f32 %v2015_v27, %v1152_v26  ;;  %v1228_v26 = vrot.slane %v2806_v32, %v1227_v10 }
 0x72d   :  { %v2357_v28 = vpop.eup %2356 }
 0x72e   :  { %v1153_v29 = vmul.f32 %v2357_v28, %v1137_v4  ;;  %v2726_v1 = vadd.f32 %v2016_v33, %v1161_v30  ;;  %v1208_v4 = vrot.slane %v2806_v32, %v1207_v61 }
 0x730   :  { %v1162_v34 = vmul.f32 %v2015_v27, %v1153_v29 }
 0x732   :  { %v2728_v35 = vadd.f32 %v2016_v33, %v1162_v34 }
 0x734   :  { %v1172_v40 = vpack.c.bf16 %v2728_v35, %v2726_v1 }
 0x736   :  { %2037 = vmatmul.mubr.msk.bf16.vlgmr.msra.gmra.mxu0 %vm78_vm1, %v1172_v40  ;;  %2038 = vmatmul.mubr.msk.bf16.vlgmr.msra.gmra.mxu1 %vm78_vm1, %v1172_v40 }
 0x737   :  { %1449 = vmatpush1.bf16.msra.mxu0 %v2274_v38  ;;  %1492 = vmatpush1.bf16.msra.mxu1 %v2277_v39 }
 0x738   :  { %1450 = vmatprep.subr.bf16.mxu0 %v2282_v41  ;;  %1493 = vmatprep.subr.bf16.mxu1 %v2285_v42  ;;  %v2304_v42 = vld [vmem:[%s2892_s10 + $0x60] ss:$40 sps:$4 sm:$0xff]  }
 0x739   :  { %1468 = vmatprep.mubr.bf16.mxu0 %v2394_v31  ;;  %1511 = vmatprep.mubr.bf16.mxu1 %v2394_v31 }
 0x73b   :  { %1451 = vmatpush1.bf16.msra.mxu0 %v2280_v37  ;;  %1494 = vmatpush1.bf16.msra.mxu1 %v2283_v43  ;;  %v2307_v37 = vld [vmem:[%s2892_s10 + $0x68] ss:$40 sps:$4 sm:$0xff]  }
 0x73c   :  { %1534 = vmatprep.subr.bf16.mxu0 %v2288_v44  ;;  %1734 = vmatprep.subr.bf16.mxu1 %v2294_v45 }
 0x73e   :  { %2039 = vmatmul.mubr.msk.bf16.vlgmr.msra.gmra.mxu0 %vm78_vm1, %v1172_v40  ;;  %2040 = vmatmul.mubr.msk.bf16.vlgmr.msra.gmra.mxu1 %vm78_vm1, %v1172_v40 }
 0x73f   :  { %1535 = vmatpush1.bf16.msra.mxu0 %v2286_v46  ;;  %1554 = vmatprep.mubr.bf16.mxu0 %v2394_v31 }
 0x740   :  { %1536 = vmatprep.subr.bf16.mxu0 %v2291_v47  ;;  %1735 = vmatpush1.bf16.xpose.msra.mxu1 %v2292_v48  ;;  %v2312_v47 = vld [vmem:[%s2892_s10 + $0x14] ss:$40 sps:$4 sm:$0xff]  }
 0x741   :  { %1736 = vmatprep.subr.bf16.mxu1 %v2300_v50  ;;  %v2315_v48 = vld [vmem:[%s2892_s10 + $0x1c] ss:$40 sps:$4 sm:$0xff]   ;;  %v1223_v50 = vsub.s32 6, %v2797_v57 }
 0x743   :  { %1537 = vmatpush1.bf16.msra.mxu0 %v2289_v23 }
 0x744   :  { %1775 = vmatprep.subr.bf16.mxu0 %v2297_v24 }
 0x746   :  { %2041 = vmatmul.mubr.msk.bf16.vlgmr.msra.gmra.mxu0 %vm78_vm1, %v1172_v40 }
 0x747   :  { %1776 = vmatpush1.bf16.xpose.msra.mxu0 %v2295_v49  ;;  %v1215_v49 = vsub.s32 4, %v2797_v57 }
 0x748   :  { %1777 = vmatprep.subr.bf16.mxu0 %v2303_v51  ;;  %1737 = vmatpush1.bf16.xpose.msra.mxu1 %v2298_v52 }
 0x749   :  { %1816 = vmatprep.subr.bf16.mxu1 %v2306_v54 }
 0x74f   :  { %1778 = vmatpush1.bf16.xpose.msra.mxu0 %v2301_v53 }
 0x750   :  { %1857 = vmatprep.subr.bf16.mxu0 %v2309_v55  ;;  %v1194_v55 = vld [vmem:[%s2891_s9 + $0x8] sm:$0x3] }
 0x751   :  { %v1236_v59 = vrot.slane %v1194_v55, %v1203_v58  ;;  %v2313_v58 = vld [vmem:[%s2892_s10 + $0x18] ss:$40 sps:$4 sm:$0xff]  }
 0x7f6   :  { %v1384_v62 = vpop.f32.mrf.mxu0  ;;  %v1427_v63 = vpop.f32.mrf.mxu1 }
 0x7f7   :  { %v1385_v16 = vadd.f32 %v1384_v62, %v1200_v3  ;;  %v1428_v31 = vadd.f32 %v1427_v63, %v1208_v4 }
 0x7f8   :  { %v1386_v6 = vpop.f32.mrf.mxu0  ;;  %v1429_v5 = vpop.f32.mrf.mxu1 }
 0x7f9   :  { %v1387_v11 = vadd.f32 %v1386_v6, %v1204_v0  ;;  %v1430_v12 = vadd.f32 %v1429_v5, %v1212_v2  ;;  %v1565_v33 = vmax.f32 %v1385_v16, 0.0  ;;  %v1567_v34 = vmax.f32 %v1428_v31, 0.0 }
 0x7fa   :  { %v1388_v8 = vpop.f32.mrf.mxu0  ;;  %v1431_v7 = vpop.f32.mrf.mxu1 }
 0x7fb   :  { %v1389_v14 = vadd.f32 %v1388_v8, %v1200_v3  ;;  %v1432_v15 = vadd.f32 %v1431_v7, %v1208_v4  ;;  %v1566_v27 = vmax.f32 %v1387_v11, 0.0  ;;  %v1568_v28 = vmax.f32 %v1430_v12, 0.0  ;;  %v2310_v8 = vld [vmem:[%s2892_s10 + $0x10] ss:$40 sps:$4 sm:$0xff]   ;;  %v2318_v11 = vld [vmem:[%s2892_s10 + $0x74] ss:$40 sps:$4 sm:$0xff]  }
 0x7fc   :  { %v1390_v13 = vpop.f32.mrf.mxu0  ;;  %v1433_v36 = vpop.f32.mrf.mxu1  ;;  %v1224_v3 = vrot.slane %v2806_v32, %v1223_v50 }
 0x7fd   :  { %v1391_v17 = vadd.f32 %v1390_v13, %v1204_v0  ;;  %v1434_v18 = vadd.f32 %v1433_v36, %v1212_v2  ;;  %v1575_v19 = vmax.f32 %v1389_v14, 0.0  ;;  %v1577_v20 = vmax.f32 %v1432_v15, 0.0 }
 0x7fe   :  { %v1470_v21 = vpop.f32.mrf.mxu0  ;;  %v1513_v22 = vpop.f32.mrf.mxu1  ;;  %v1216_v2 = vrot.slane %v2806_v32, %v1215_v49 }
 0x7ff   :  { %v1576_v29 = vmax.f32 %v1391_v17, 0.0  ;;  %v1578_v30 = vmax.f32 %v1434_v18, 0.0  ;;  %v1585_v43 = vpack.c.bf16 %v1575_v19, %v1565_v33  ;;  %v1587_v44 = vpack.c.bf16 %v1577_v20, %v1567_v34 }
 0x800   :  { %v1472_v38 = vpop.f32.mrf.mxu0  ;;  %v1515_v39 = vpop.f32.mrf.mxu1  ;;  %v1471_v32 = vadd.f32 %v1470_v21, %v1216_v2  ;;  %v1514_v14 = vadd.f32 %v1513_v22, %v1224_v3  ;;  %v2321_v21 = vld [vmem:[%s2892_s10 + $0x24] ss:$40 sps:$4 sm:$0xff]   ;;  %v1232_v22 = vrot.slane %v1194_v55, %v1199_v60 }
 0x801   :  { %v1586_v40 = vpack.c.bf16 %v1576_v29, %v1566_v27  ;;  %v1588_v41 = vpack.c.bf16 %v1578_v30, %v1568_v28  ;;  %v1473_v23 = vadd.f32 %v1472_v38, %v1220_v25  ;;  %v1516_v24 = vadd.f32 %v1515_v39, %v1228_v26  ;;  %v2319_v28 = vld [vmem:[%s2892_s10 + $0x20] ss:$40 sps:$4 sm:$0xff]  }
 0x802   :  { %v1474_v45 = vpop.f32.mrf.mxu0  ;;  %v1517_v46 = vpop.f32.mrf.mxu1  ;;  %v1569_v18 = vmax.f32 %v1471_v32, 0.0  ;;  %v1571_v19 = vmax.f32 %v1514_v14, 0.0 }
 0x803   :  { %1754 = vmatprep.mubr.bf16.mxu1 %v1586_v40  ;;  %1795 = vmatprep.mubr.bf16.mxu0 %v1588_v41  ;;  %v1570_v61 = vmax.f32 %v1473_v23, 0.0  ;;  %v1572_v62 = vmax.f32 %v1516_v24, 0.0  ;;  %v1475_v7 = vadd.f32 %v1474_v45, %v1216_v2  ;;  %v1518_v9 = vadd.f32 %v1517_v46, %v1224_v3  ;;  %v2042_v46 = vld [vmem:[%s2893_s11] ss:$0 sm:$0xff] }
 0x804   :  { %v1476_v51 = vpop.f32.mrf.mxu0  ;;  %v1519_v52 = vpop.f32.mrf.mxu1  ;;  %1755 = vmatmul.mubr.bf16.vlgmr.msra.gmra.mxu1 %v1585_v43  ;;  %1796 = vmatmul.mubr.bf16.vlgmr.msra.gmra.mxu0 %v1587_v44 }
 0x805   :  { %v1477_v53 = vadd.f32 %v1476_v51, %v1220_v25  ;;  %v1520_v54 = vadd.f32 %v1519_v52, %v1228_v26  ;;  %1817 = vmatpush1.bf16.xpose.msra.mxu1 %v2304_v42  ;;  %1858 = vmatpush1.bf16.xpose.msra.mxu0 %v2307_v37  ;;  %v1579_v31 = vmax.f32 %v1475_v7, 0.0  ;;  %v1581_v13 = vmax.f32 %v1518_v9, 0.0  ;;  %v2316_v25 = vld [vmem:[%s2892_s10 + $0x70] ss:$40 sps:$4 sm:$0xff]  }
 0x806   :  { %v1556_v56 = vpop.f32.mrf.mxu0  ;;  %1818 = vmatprep.subr.bf16.mxu1 %v2312_v47  ;;  %1859 = vmatprep.subr.bf16.mxu0 %v2315_v48 }
 0x807   :  { %v1580_v63 = vmax.f32 %v1477_v53, 0.0  ;;  %v1582_v0 = vmax.f32 %v1520_v54, 0.0  ;;  %v1589_v26 = vpack.c.bf16 %v1579_v31, %v1569_v18  ;;  %v1591_v27 = vpack.c.bf16 %v1581_v13, %v1571_v19 }
 0x808   :  { %v1558_v4 = vpop.f32.mrf.mxu0  ;;  %v1557_v30 = vadd.f32 %v1556_v56, %v1232_v22 }
 0x809   :  { %v1590_v6 = vpack.c.bf16 %v1580_v63, %v1570_v61  ;;  %v1592_v5 = vpack.c.bf16 %v1582_v0, %v1572_v62  ;;  %v1559_v12 = vadd.f32 %v1558_v4, %v1236_v59 }
 0x80a   :  { %v1560_v10 = vpop.f32.mrf.mxu0  ;;  %v1573_v34 = vmax.f32 %v1557_v30, 0.0 }
 0x80b   :  { %1836 = vmatprep.mubr.bf16.mxu1 %v1590_v6  ;;  %1877 = vmatprep.mubr.bf16.mxu0 %v1592_v5  ;;  %v1574_v36 = vmax.f32 %v1559_v12, 0.0  ;;  %v1561_v29 = vadd.f32 %v1560_v10, %v1232_v22 }
 0x80c   :  { %v1562_v15 = vpop.f32.mrf.mxu0 }
 0x80d   :  { %v1563_v16 = vadd.f32 %v1562_v15, %v1236_v59  ;;  %1819 = vmatpush1.bf16.xpose.msra.mxu1 %v2310_v8  ;;  %1860 = vmatpush1.bf16.xpose.msra.mxu0 %v2313_v58  ;;  %v1583_v33 = vmax.f32 %v1561_v29, 0.0 }
 0x80e   :  { %1898 = vmatprep.subr.bf16.mxu1 %v2318_v11 }
 0x80f   :  { %v1584_v17 = vmax.f32 %v1563_v16, 0.0  ;;  %v1593_v38 = vpack.c.bf16 %v1583_v33, %v1573_v34 }
 0x811   :  { %v1594_v20 = vpack.c.bf16 %v1584_v17, %v1574_v36 }
 0x814   :  { %1837 = vmatmul.mubr.bf16.vlgmr.msra.gmra.mxu1 %v1589_v26  ;;  %1878 = vmatmul.mubr.bf16.vlgmr.msra.gmra.mxu0 %v1591_v27  ;;  %v2064_v26 = vld [vmem:[%s2895_s13] ss:$0 sm:$0xff] }
 0x815   :  { %1899 = vmatpush1.bf16.xpose.msra.mxu1 %v2316_v25  ;;  %1918 = vmatprep.mubr.bf16.mxu1 %v1594_v20  ;;  %v2063_v20 = vld [vmem:[%s2894_s12] ss:$0 sm:$0xff] }
 0x816   :  { %1900 = vmatprep.subr.bf16.mxu1 %v2321_v21 }
 0x81d   :  { %1901 = vmatpush1.bf16.xpose.msra.mxu1 %v2319_v28 }
 0x824   :  { %1919 = vmatmul.mubr.bf16.vlgmr.msra.gmra.mxu1 %v1593_v38 }
 0x8c4   :  { %v1756_v39 = vpop.f32.mrf.mxu1  ;;  %v1797_v40 = vpop.f32.mrf.mxu0 }
 0x8c5   :  { %v1757_v49 = vadd.f32 %v2042_v46, %v1756_v39 }
 0x8c6   :  { %v1758_v41 = vpop.f32.mrf.mxu1  ;;  %v1799_v42 = vpop.f32.mrf.mxu0 }
 0x8c7   :  { %v1798_v52 = vadd.f32 %v1797_v40, %v1757_v49 }
 0x8c8   :  { %v1759_v37 = vpop.f32.mrf.mxu1  ;;  %v1800_v43 = vpop.f32.mrf.mxu0 }
 0x8c9   :  { %v1760_v53 = vadd.f32 %v2042_v46, %v1759_v37 }
 0x8ca   :  { %v1761_v44 = vpop.f32.mrf.mxu1  ;;  %v1802_v57 = vpop.f32.mrf.mxu0 }
 0x8cb   :  { %v1801_v55 = vadd.f32 %v1800_v43, %v1760_v53 }
 0x8d4   :  { %v1838_v60 = vpop.f32.mrf.mxu1  ;;  %v1879_v45 = vpop.f32.mrf.mxu0 }
 0x8d5   :  { %v1839_v54 = vadd.f32 %v1838_v60, %v1798_v52 }
 0x8d6   :  { %v1840_v47 = vpop.f32.mrf.mxu1  ;;  %v1881_v48 = vpop.f32.mrf.mxu0 }
 0x8d7   :  { %v1880_v56 = vadd.f32 %v1879_v45, %v1839_v54 }
 0x8d8   :  { %v1841_v23 = vpop.f32.mrf.mxu1  ;;  %v1882_v24 = vpop.f32.mrf.mxu0 }
 0x8d9   :  { %v1842_v59 = vadd.f32 %v1841_v23, %v1801_v55 }
 0x8da   :  { %v1843_v50 = vpop.f32.mrf.mxu1  ;;  %v1884_v51 = vpop.f32.mrf.mxu0 }
 0x8db   :  { %v1883_v0 = vadd.f32 %v1882_v24, %v1842_v59 }
 0x8e4   :  { %v1920_v61 = vpop.f32.mrf.mxu1 }
 0x8e5   :  { %v1921_v62 = vadd.f32 %v1920_v61, %v1880_v56 }
 0x8e6   :  { %v1922_v63 = vpop.f32.mrf.mxu1 }
 0x8e7   :  { %v1927_v2 = vadd.f32 %v1921_v62, %v2726_v1 }
 0x8e8   :  { %v1923_v3 = vpop.f32.mrf.mxu1 }
 0x8e9   :  { %v1924_v4 = vadd.f32 %v1923_v3, %v1883_v0  ;;  %v1929_v6 = vsel %vm78_vm1, %v1927_v2, 0.0 }
 0x8ea   :  { %v1925_v5 = vpop.f32.mrf.mxu1  ;;  %1930 = vadd.xlane.f32.xlu1 %v1929_v6 }
 0x8eb   :  { %v1928_v8 = vadd.f32 %v1924_v4, %v2728_v35 }
 0x8ed   :  { %v1932_v58 = vsel %vm78_vm1, %v1928_v8, 0.0 }
 0x8ee   :  { %1933 = vadd.xlane.f32.xlu0 %v1932_v58 }
 0x973   :  { %v1931_v7 = vpop.xlane.xlu1 %1930 }
 0x974   :  { %v1935_v9 = vmul.f32 0.03125, %v1931_v7 }
 0x976   :  { %v1937_v10 = vsub.f32 %v1927_v2, %v1935_v9 }
 0x977   :  { %v1934_v11 = vpop.xlane.xlu0 %1933 }
 0x978   :  { %v1936_v12 = vmul.f32 0.03125, %v1934_v11  ;;  %v1939_v32 = vmul.f32 %v1937_v10, %v1937_v10 }
 0x97a   :  { %v1938_v14 = vsub.f32 %v1928_v8, %v1936_v12  ;;  %v1941_v1 = vsel %vm78_vm1, %v1939_v32, 0.0 }
 0x97b   :  { %1942 = vadd.xlane.f32.xlu1 %v1941_v1 }
 0x97c   :  { %v1940_v15 = vmul.f32 %v1938_v14, %v1938_v14 }
 0x97e   :  { %v1944_v16 = vsel %vm78_vm1, %v1940_v15, 0.0 }
 0x97f   :  { %1945 = vadd.xlane.f32.xlu0 %v1944_v16 }
 0xa04   :  { %v1943_v31 = vpop.xlane.xlu1 %1942 }
 0xa05   :  { %v1947_v13 = vmul.f32 0.03125, %v1943_v31 }
 0xa07   :  { %v1949_v35 = vadd.f32 1e-05, %v1947_v13 }
 0xa08   :  { %v1946_v36 = vpop.xlane.xlu0 %1945 }
 0xa09   :  { %2358 = vrsqrt.f32 %v1949_v35  ;;  %v1948_v17 = vmul.f32 0.03125, %v1946_v36 }
 0xa0b   :  { %v1950_v18 = vadd.f32 1e-05, %v1948_v17 }
 0xa0d   :  { %2360 = vrsqrt.f32 %v1950_v18 }
 0xa16   :  { %v2359_v19 = vpop.eup %2358 }
 0xa17   :  { %v1953_v25 = vmul.f32 %v2359_v19, %v1937_v10 }
 0xa19   :  { %v1962_v27 = vmul.f32 %v2063_v20, %v1953_v25 }
 0xa1a   :  { %v2361_v21 = vpop.eup %2360 }
 0xa1b   :  { %v1954_v22 = vmul.f32 %v2361_v21, %v1938_v14  ;;  %v1971_v28 = vadd.f32 %v2064_v26, %v1962_v27 }
 0xa1d   :  { %v1963_v29 = vmul.f32 %v2063_v20, %v1954_v22  ;;  %1973 = vst.msk [vmem:[#allocation2] sm:$0xff] %vm78_vm1, %v1971_v28 }
 0xa1f   :  { %v1972_v30 = vadd.f32 %v2064_v26, %v1963_v29 }
 0xa21   :  { %1974 = vst.msk [vmem:[#allocation2 + $0x8] sm:$0xff] %vm78_vm1, %v1972_v30 }
 0xa22   :  { %2373 = shalt.err (!%p2370_p4)
}
 0xa23   :  { %s2396_s12 = smov 128  }
 0xa24   :  { %1986 = dma.vmem_to_hbm [thread:$0]  %s1981_s5, 256, %s2896_s14, [#allocation3], %s2396_s12, %s2396_s12, %s2391_s26  }
 0xa25   :  { %2382 = dma.done.wait [#allocation3], 256  }
 0xa26   :  { %2383 = vsyncadd [#allocation3], 4294967040 }
 0xa27   :  { %1990 = vsyncpa [#allocation3], 1 }

</bundles_post_ra>
